<compile_context>
chip_gen: v6e
topology: v6e:2x2x1
jax: 0.10.0
libtpu: 0.0.40
codegen_flags: <defaults>
</compile_context>

<pallas_src>
import jax
import jax.numpy as jnp
from jax.experimental import pallas as pl
from jax.experimental.pallas import tpu as pltpu

_LANES = 128
_TARGET_BLOCK_BYTES = 2 * 1024 * 1024    # ~2 MiB per block; 4 pipeline buffers -> 8 MiB VMEM
_MIN_PALLAS_BYTES = 128 * 1024           # below this the fused XLA multiply wins


def _drop_path_kernel(scales_ref, x_ref, o_ref):
    """out = x * scales[b]  (multiply in f32, cast on store).

    scales_ref : SMEM f32 [B]        per-sample scale (0.0 or 1/keep_prob or 1.0)
    x_ref      : VMEM [1, tile_r, 128]
    o_ref      : VMEM [1, tile_r, 128]
    """
    b = pl.program_id(0)
    scale = scales_ref[b]                                            # f32 scalar
    o_ref[...] = (x_ref[...].astype(jnp.float32) * scale).astype(o_ref.dtype)


def _choose_tile_rows(R, B, itemsize):
    """Pick the sublane-row tile: ~2 MiB blocks, (nearly) even split of R,
    and enough blocks for both v7x TensorCores when the batch is tiny."""
    sub = 8 * max(1, 4 // itemsize)                  # 8 (f32) / 16 (bf16) / 32 (i8)
    max_rows = max(sub, (_TARGET_BLOCK_BYTES // (_LANES * itemsize)) // sub * sub)

    n_r = pl.cdiv(R, max_rows)
    # Megacore balance (v7x): with a small batch force >= 2 row-blocks so both
    # TensorCores get comparable work even when R fits in a single block.
    if B < 4 and n_r == 1 and R >= 2 * sub:
        n_r = 2
    if n_r == 1:
        return R                                     # full-extent block is always legal
    rows = -(-R // n_r)                              # ceil(R / n_r): nearly even split
    rows = -(-rows // sub) * sub                     # round up to sublane multiple
    return min(max_rows, max(sub, rows))


def _drop_path_pallas(x3, scales):
    """x3: (B, R, 128); scales: (B,) f32."""
    B, R, _ = x3.shape
    tile_r = _choose_tile_rows(R, B, x3.dtype.itemsize)
    grid = (B, pl.cdiv(R, tile_r))

    return pl.pallas_call(
        _drop_path_kernel,
        out_shape=jax.ShapeDtypeStruct(x3.shape, x3.dtype),
        grid=grid,
        in_specs=[
            pl.BlockSpec(memory_space=pltpu.MemorySpace.SMEM),          # scales, whole array
            pl.BlockSpec((1, tile_r, _LANES), lambda b, r: (b, r, 0)),
        ],
        out_specs=pl.BlockSpec((1, tile_r, _LANES), lambda b, r: (b, r, 0)),
        compiler_params=pltpu.CompilerParams(
            dimension_semantics=("parallel", "parallel")),
        cost_estimate=pl.CostEstimate(
            flops=x3.size,
            transcendentals=0,
            bytes_accessed=2 * x3.size * x3.dtype.itemsize),
    )(scales, x3)


def drop_path(x, key, drop_prob=0.0, training=True, scale_by_keep=True):
    """Pallas implementation of timm-style drop_path on an NCHW (or any-rank) input."""
    if drop_prob == 0.0 or not training:
        return x

    keep_prob = 1.0 - drop_prob
    B = x.shape[0]
    orig_shape = x.shape

    feat = 1
    for d in x.shape[1:]:
        feat *= d

    # Per-sample Bernoulli keep flags (JAX RNG), folded into per-sample f32 scales.
    keep = (jax.random.uniform(key, (B,)) < keep_prob).astype(jnp.float32)
    if scale_by_keep and keep_prob > 0.0:
        scales = keep / keep_prob
    else:
        scales = keep

    total_bytes = x.size * x.dtype.itemsize
    if (feat % _LANES != 0) or (feat // _LANES < 8) or (total_bytes < _MIN_PALLAS_BYTES):
        # Ragged or tiny inputs: a fused XLA broadcast multiply already sits at the
        # HBM roofline and avoids pad/slice copies and pallas_call launch overhead.
        bshape = (B,) + (1,) * (x.ndim - 1)
        return (x.astype(jnp.float32) * scales.reshape(bshape)).astype(x.dtype)

    R = feat // _LANES
    x3 = x.reshape(B, R, _LANES)                     # pure reshape: no HBM copy
    # TODO(synk): for very large maps, dropped samples could skip the x HBM read
    # entirely (pl.ANY + manual make_async_copy guarded by pl.when(scale != 0));
    # not worth the complexity at these sizes.
    out3 = _drop_path_pallas(x3, scales)
    return out3.reshape(orig_shape)


class DropPath:
    """Drop paths (Stochastic Depth) per sample — Pallas/TPU version."""

    def __init__(self, drop_prob: float = 0.0, scale_by_keep: bool = True):
        self.drop_prob = drop_prob
        self.scale_by_keep = scale_by_keep
        self.training = True

    def __call__(self, x, key):
        return drop_path(x, key, self.drop_prob, self.training, self.scale_by_keep)

    def extra_repr(self):
        return f"drop_prob={round(self.drop_prob, 3):0.3f}"


if __name__ == "__main__":
    root = jax.random.PRNGKey(0)
    k_x1, k_x2, k_drop = jax.random.split(root, 3)

    drop_prob = 0.3
    keep_prob = 1.0 - drop_prob
    module = DropPath(drop_prob=drop_prob, scale_by_keep=True)
    module.training = True

    def reference(x, key):
        keep_flags = (jax.random.uniform(key, (x.shape[0],)) < keep_prob).astype(jnp.float32)
        bshape = (x.shape[0],) + (1,) * (x.ndim - 1)
        return x * (keep_flags / keep_prob).reshape(bshape)

    # 1) Module-implied small shape (2,4,16,16): exercises the tiny-input fallback.
    x_small = jax.random.normal(k_x1, (2, 4, 16, 16), dtype=jnp.float32)
    out_small = jax.block_until_ready(module(x_small, k_drop))
    assert out_small.shape == x_small.shape and out_small.dtype == x_small.dtype
    assert jnp.allclose(out_small, reference(x_small, k_drop), atol=1e-6, rtol=1e-6)

    # 2) Aligned larger shape (2,64,32,32): Pallas path, grid (2,2), 256-row tiles.
    x_big = jax.random.normal(k_x2, (2, 64, 32, 32), dtype=jnp.float32)
    out_big = jax.block_until_ready(module(x_big, k_drop))
    assert out_big.shape == x_big.shape and out_big.dtype == x_big.dtype
    assert jnp.allclose(out_big, reference(x_big, k_drop), atol=1e-6, rtol=1e-6)

    # 3) Eval mode / drop_prob == 0 -> identity.
    module.training = False
    out_eval = jax.block_until_ready(module(x_big, k_drop))
    assert jnp.array_equal(out_eval, x_big)

    print("KERNEL_OK")
</pallas_src>

<mosaic_0001>
module attributes {stable_mosaic.version = 11 : i64} {
  func.func @_drop_path_kernel(%arg0: i32, %arg1: i32, %arg2: memref<2xf32, #tpu.memory_space<smem>>, %arg3: memref<1x256x128xf32, #tpu.memory_space<vmem>>, %arg4: memref<1x256x128xf32, #tpu.memory_space<vmem>>) attributes {dimension_semantics = [#tpu.dimension_semantics<parallel>, #tpu.dimension_semantics<parallel>], iteration_bounds = array<i64: 2, 2>, scalar_prefetch = 0 : i64, scratch_operands = 0 : i64, tpu.core_type = #tpu.core_type<tc>, window_params = [{transform_indices = @transform_0, window_bounds = array<i64: 2>}, {transform_indices = @transform_1, window_bounds = array<i64: 1, 256, 128>}, {transform_indices = @transform_2, window_bounds = array<i64: 1, 256, 128>}]} {
    %0 = arith.index_cast %arg0 : i32 to index
    %1 = memref.load %arg2[%0] : memref<2xf32, #tpu.memory_space<smem>>
    %c0 = arith.constant 0 : index
    %c0_0 = arith.constant 0 : index
    %c0_1 = arith.constant 0 : index
    %2 = vector.load %arg3[%c0, %c0_0, %c0_1] : memref<1x256x128xf32, #tpu.memory_space<vmem>>, vector<1x256x128xf32>
    %3 = vector.broadcast %1 : f32 to vector<1x256x128xf32>
    %4 = arith.mulf %2, %3 : vector<1x256x128xf32>
    %c0_2 = arith.constant 0 : index
    %c0_3 = arith.constant 0 : index
    %c0_4 = arith.constant 0 : index
    %5 = vector.load %arg4[%c0_2, %c0_3, %c0_4] : memref<1x256x128xf32, #tpu.memory_space<vmem>>, vector<1x256x128xf32>
    tpu.vector_store %arg4[%c0_2, %c0_3, %c0_4], %4 {strides = array<i32>} : memref<1x256x128xf32, #tpu.memory_space<vmem>>, vector<1x256x128xf32>,
    return
  }
  func.func @transform_0(%arg0: i32, %arg1: i32) -> i32 {
    %c0_i32 = arith.constant 0 : i32
    %c0_i32_0 = arith.constant 0 : i32
    return %c0_i32 : i32
  }
  func.func @transform_1(%arg0: i32, %arg1: i32) -> (i32, i32, i32) {
    %c0_i32 = arith.constant 0 : i32
    %c0_i32_0 = arith.constant 0 : i32
    return %arg0, %arg1, %c0_i32 : i32, i32, i32
  }
  func.func @transform_2(%arg0: i32, %arg1: i32) -> (i32, i32, i32) {
    %c0_i32 = arith.constant 0 : i32
    %c0_i32_0 = arith.constant 0 : i32
    return %arg0, %arg1, %c0_i32 : i32, i32, i32
  }
}

</mosaic_0001>

<bundles_post_ra>
// kernel: tpu_custom_call.1
= control target key start
LH: loop header
LB: loop body
LE: loop exit
PB: predicated region body
PF: predicated region fallthrough
CT: control target
= control target key end

     0   :  { %s981_s0 = inlined_call_operand.hbm [shape: f32[2], index: 0, kind: input, shape index: {}]   ;;  %s982_s1 = inlined_call_operand.hbm [shape: f32[2,512,128], index: 1, kind: input, shape index: {}]   ;;  %s983_s2 = inlined_call_operand.hbm [shape: f32[2,512,128], index: 2, kind: output, shape index: {}]  }
   0x1   :  { %990 = sst [smem:[#allocation16_spill]] %s981_s0 }
   0x2   :  { %7 = vsyncpa [#allocation5], 0 }
   0x3   :  { %8 = vsyncpa [#allocation3], 0 }
   0x4   :  { %10 = vsyncpa [#allocation3 + $0x1], 0 }
   0x5   :  { %11 = vsyncpa [#allocation4], 0 }
   0x6   :  { %13 = vsyncpa [#allocation4 + $0x1], 0  ;;  %s685_s9 = smov 0   ;;  %s687_s10 = smov 0  }
   0x7   :  { %s689_s11 = smov 0   ;;  %s691_s12 = smov 0  }
   0x8   :  { %s693_s13 = smov 0   ;;  %s695_s14 = smov 0  }
   0x9   :  { %s697_s15 = smov 0   ;;  %s699_s16 = smov 0  }
   0xa LB: > { %991 = sst [smem:[#allocation11_spill]] %s633_s9  ;;  %s410_s17 = sadd.s32 4294967295, %s661_s16   ;;  %s661_s16 = sphi %s699_s16, %s19_s16   ;;  %s657_s15 = sphi %s697_s15, %s1015_s15   ;;  %s653_s14 = sphi %s695_s14, %s1010_s14   ;;  %s649_s13 = sphi %s693_s13, %s1014_s13   ;;  %s645_s12 = sphi %s691_s12, %s1009_s12   ;;  %s641_s11 = sphi %s689_s11, %s1013_s11   ;;  %s637_s10 = sphi %s687_s10, %s1012_s10   ;;  %s633_s9 = sphi %s685_s9, %s1011_s9  }
   0xb   : > { %992 = sst [smem:[#allocation12_spill]] %s653_s14  ;;  %s411_s18 = sadd.s32 4294967294, %s661_s16  }
   0xc   : > { %993 = sst [smem:[#allocation13_spill]] %s661_s16  ;;  %p68_p0 = scmp.ne.s32.totalorder %s641_s11, %s637_s10 }
   0xd   : > { %p69_p1 = scmp.eq.s32.totalorder %s661_s16, 0  ;;  %p74_p2 = scmp.ne.s32.totalorder %s637_s10, %s633_s9 }
   0xe   : > { %p733_p3 = scmp.eq.s32.totalorder %s410_s17, 0  ;;  %p100_p4 = scmp.eq.s32.totalorder %s410_s17, 3 }
   0xf   : > { %p70_p5 = por %p69_p1, %p68_p0  ;;  %p106_p6 = scmp.eq.s32.totalorder %s411_s18, 3 }
  0x10   : > { %p739_p7 = por %p733_p3, %p74_p2  ;;  %p743_p8 = por %p100_p4, %p68_p0 }
  0x11   : > { %p747_p9 = por %p106_p6, %p74_p2  ;;  %p412_p10 = scmp.ge.s32.totalorder %s661_s16, 1 }
  0x12   : > { %p113_p11 = scmp.lt.s32.totalorder %s661_s16, 5  ;;  %p450_p13 = scmp.lt.s32.totalorder %s661_s16, 4 }
  0x13   : > { %s997_s23 = scalar_select %p747_p9, 1, 0 }
  0x14   : > { %p753_p12 = pnand %p412_p10, %p113_p11  ;;  %p760_p1 = pnand %p450_p13, %p70_p5 }
  0x15   : > { %998 = sst [smem:[#allocation14_spill]] %s997_s23  ;;  %s28_s26 = sadd.s32 1, %s653_s14 }
  0x16   : > { %p437_p0 = pneg %p753_p12  ;;  %s31_s27 = sadd.s32 1, %s657_s15 }
  0x17   : > { %p29_p4 = scmp.ge.s32.totalorder %s28_s26, 2  ;;  %s663_s28 = smov [#allocation2]  }
  0x18   : > { %p438_p2 = pnand %p437_p0, %p733_p3  ;;  %s1001_s0 = sld [smem:[#allocation16_spill]] }
  0x19   : > { %s1017_s26 = smov (%p29_p4, %s28_s26), 0  ;;  %s1019_s27 = smov (!%p29_p4, %s31_s27), %s657_s15 }
  0x1a   : > { %1002 = sst [smem:[#allocation15_spill]] %s1017_s26  ;;  %s57_s3 = ssub.s32 %s653_s14, %s1017_s26 }
  0x1b   : > { %s135_s4 = sand.u32 1, %s641_s11   ;;  %p33_p5 = scmp.ge.s32.totalorder %s1019_s27, 2 }
  0x1c   : > { %s415_s5 = sshll.u32 %s135_s4, 8  ;;  %s416_s6 = sshll.u32 %s653_s14, 5 }
  0x1d   : > { %s1021_s27 = smov (%p33_p5, %s1019_s27), 0  ;;  %s417_s7 = sshll.u32 %s657_s15, 6 }
  0x1e   : > { %440 = dma.hbm_to_smem (!%p438_p2), %s1001_s0, 16, %s663_s28, [#allocation5]  }
  0x1f   : > { %s56_s8 = ssub.s32 %s657_s15, %s1021_s27  ;;  %s145_s17 = sadd.s32 %s417_s7, %s416_s6 }
  0x20   : > { %s58_s18 = sor.u32 %s57_s3, %s56_s8  ;;  %s418_s28 = sshll.u32 %s145_s17, 7 }
  0x21   : > { %p59_p6 = scmp.eq.s32.totalorder %s58_s18, 0  ;;  %s147_s19 = scalar_lea.hbm %s982_s1, %s418_s28 }
  0x22   : > { %s139_s0 = scalar_lea.vmem [#allocation6], %s415_s5  ;;  %s1003_s23 = sadd.s32 1, %s641_s11 }
  0x23   : > { %s148_s26 = sshll.u32 %s139_s0, 4  ;;  %s136_s14 = scalar_lea.sflag [#allocation3], %s135_s4  ;;  %s149_s26 = int_to_ptr.vmem [resolvable:$true] %s148_s26 }
  0x24   : > { %s789_s9 = scalar_select %p59_p6, %s641_s11, %s1003_s23  }
  0x25   : > { %p535_p10 = pneg %p760_p1  ;;  %s546_s16 = scalar_lea.vmem %s149_s26, 4096 }
  0x26   : > { %p547_p11 = scmp.ne.s32.totalorder %s149_s26, %s546_s16  ;;  %s664_s3 = smov [#allocation6]  }
  0x27   : > { %s551_s6 = sshll.u32 %s664_s3, 4  ;;  %s552_s6 = int_to_ptr.vmem [resolvable:$false] %s551_s6 }
  0x28   : > { %p549_p13 = pnand %p547_p11, %p535_p10  ;;  %s553_s7 = scalar_lea.vmem %s552_s6, 8192 }
  0x29   : > { %p554_p2 = scmp.lt.s32.totalorder %s149_s26, %s552_s6  ;;  %p555_p4 = scmp.lt.s32.totalorder %s553_s7, %s546_s16 }
  0x2a   : > { %p550_p0 = pneg %p549_p13 }
  0x2b   : > { %p556_p5 = por %p555_p4, %p554_p2 }
  0x2d   : > { %p557_p9 = pnand %p556_p5, %p550_p0 }
  0x2f   : > { %560 = shalt.err (!%p557_p9)
}
  0x30   : > { %s665_s0 = smov 128   ;;  %s666_s23 = smov 8  }
  0x31   : > { %444 = dma.hbm_to_vmem [thread:$0]  (!%p760_p1), %s147_s19, 4096, %s149_s26, %s136_s14, %s665_s0, %s665_s0, %s666_s23  }
  0x32   : > { %160 = sbr.rel (%p753_p12) target bundleno = 100 (0x64), region = 28 }
  0x37   : > { %620 = dma.done.wait (%p733_p3), [#allocation5], 16  }
  0x38   : > { %622 = vsyncadd (%p733_p3), [#allocation5], 4294967280  ;;  %s802_s16 = sand.u32 1, %s637_s10  }
  0x39   : > { %s421_s4 = sshll.u32 %s802_s16, 8  ;;  %s167_s5 = scalar_lea.sflag [#allocation3], %s802_s16 }
  0x3a   : > { %s808_s14 = scalar_lea.vmem [#allocation6], %s421_s4 }
  0x3b   : > { %624 = dma.done.wait (%p739_p7), %s167_s5, 4096  }
  0x3c   : > { %626 = vsyncadd (%p739_p7), %s167_s5, 4294963200 }
  0x3d   : > { %175 = sfence }
  0x3e   : > { %s194_s19 = sld [smem:[#allocation2 + %s649_s13]]  ;;  %v195_v0 = vld [vmem:[%s808_s14] sm:$0xff]  ;;  %v196_v1 = vld [vmem:[%s808_s14 + $0x8] sm:$0xff]  ;;  %v197_v2 = vld [vmem:[%s808_s14 + $0x10] sm:$0xff]  ;;  %s424_s20 = sshll.u32 %s645_s12, 5 }
  0x3f   : > { %v198_v3 = vld [vmem:[%s808_s14 + $0x18] sm:$0xff]  ;;  %v199_v4 = vld [vmem:[%s808_s14 + $0x20] sm:$0xff]  ;;  %v200_v5 = vld [vmem:[%s808_s14 + $0x28] sm:$0xff]  ;;  %s425_s21 = sshll.u32 %s649_s13, 6  ;;  %s854_s13 = scalar_lea.vmem [#allocation7], %s421_s4 }
  0x40   : > { %v201_v6 = vld [vmem:[%s808_s14 + $0x30] sm:$0xff]  ;;  %v202_v7 = vld [vmem:[%s808_s14 + $0x38] sm:$0xff]  ;;  %v203_v8 = vld [vmem:[%s808_s14 + $0x40] sm:$0xff]  ;;  %s850_s12 = sadd.s32 %s425_s21, %s424_s20  ;;  %s308_s24 = sshll.u32 %s854_s13, 4  ;;  %s907_s24 = int_to_ptr.vmem [resolvable:$true] %s308_s24 }
  0x41   : > { %v204_v9 = vld [vmem:[%s808_s14 + $0x48] sm:$0xff]  ;;  %v205_v10 = vld [vmem:[%s808_s14 + $0x50] sm:$0xff]  ;;  %v206_v11 = vld [vmem:[%s808_s14 + $0x58] sm:$0xff]  ;;  %s426_s25 = sshll.u32 %s850_s12, 7  ;;  %s293_s18 = scalar_lea.sflag [#allocation4], %s802_s16 }
  0x42   : > { %v207_v12 = vld [vmem:[%s808_s14 + $0x60] sm:$0xff]  ;;  %v208_v13 = vld [vmem:[%s808_s14 + $0x68] sm:$0xff]  ;;  %v209_v15 = vld [vmem:[%s808_s14 + $0x70] sm:$0xff]  ;;  %s920_s17 = scalar_lea.hbm %s983_s2, %s426_s25  ;;  %s561_s28 = scalar_lea.vmem %s907_s24, 4096 }
  0x43   : > { %v210_v16 = vld [vmem:[%s808_s14 + $0x78] sm:$0xff]  ;;  %v211_v17 = vld [vmem:[%s808_s14 + $0x80] sm:$0xff]  ;;  %v212_v22 = vld [vmem:[%s808_s14 + $0x88] sm:$0xff]  ;;  %p562_p3 = scmp.ne.s32.totalorder %s907_s24, %s561_s28  ;;  %s667_s29 = smov [#allocation7]  }
  0x44   : > { %v831_v14 = vstv %s194_s19  ;;  %v213_v23 = vld [vmem:[%s808_s14 + $0x90] sm:$0xff]  ;;  %v214_v24 = vld [vmem:[%s808_s14 + $0x98] sm:$0xff]  ;;  %v215_v29 = vld [vmem:[%s808_s14 + $0xa0] sm:$0xff]  ;;  %s565_s30 = sshll.u32 %s667_s29, 4  ;;  %s566_s30 = int_to_ptr.vmem [resolvable:$false] %s565_s30 }
  0x45   : > { %v228_v18 = vmul.f32 %v831_v14, %v195_v0  ;;  %v229_v19 = vmul.f32 %v831_v14, %v196_v1  ;;  %v230_v20 = vmul.f32 %v831_v14, %v197_v2  ;;  %v231_v21 = vmul.f32 %v831_v14, %v198_v3  ;;  %v216_v30 = vld [vmem:[%s808_s14 + $0xa8] sm:$0xff]  ;;  %v217_v31 = vld [vmem:[%s808_s14 + $0xb0] sm:$0xff]  ;;  %v218_v36 = vld [vmem:[%s808_s14 + $0xb8] sm:$0xff]  ;;  %p563_p7 = pnand %p562_p3, %p743_p8  ;;  %s567_s3 = scalar_lea.vmem %s566_s30, 8192 }
  0x46   : > { %v232_v25 = vmul.f32 %v831_v14, %v199_v4  ;;  %v233_v26 = vmul.f32 %v831_v14, %v200_v5  ;;  %v234_v27 = vmul.f32 %v831_v14, %v201_v6  ;;  %v235_v28 = vmul.f32 %v831_v14, %v202_v7  ;;  %v219_v37 = vld [vmem:[%s808_s14 + $0xc0] sm:$0xff]  ;;  %v220_v38 = vld [vmem:[%s808_s14 + $0xc8] sm:$0xff]  ;;  %v221_v43 = vld [vmem:[%s808_s14 + $0xd0] sm:$0xff]  ;;  %p568_p12 = scmp.lt.s32.totalorder %s907_s24, %s566_s30  ;;  %p569_p1 = scmp.lt.s32.totalorder %s567_s3, %s561_s28 }
  0x47   : > { %260 = vst [vmem:[%s854_s13] sm:$0xff] %v228_v18  ;;  %261 = vst [vmem:[%s854_s13 + $0x8] sm:$0xff] %v229_v19  ;;  %v236_v32 = vmul.f32 %v831_v14, %v203_v8  ;;  %v237_v33 = vmul.f32 %v831_v14, %v204_v9  ;;  %v238_v34 = vmul.f32 %v831_v14, %v205_v10  ;;  %v222_v44 = vld [vmem:[%s808_s14 + $0xd8] sm:$0xff]  ;;  %v223_v45 = vld [vmem:[%s808_s14 + $0xe0] sm:$0xff]  ;;  %p564_p9 = pneg %p563_p7 }
  0x48   : > { %262 = vst [vmem:[%s854_s13 + $0x10] sm:$0xff] %v230_v20  ;;  %263 = vst [vmem:[%s854_s13 + $0x18] sm:$0xff] %v231_v21  ;;  %v239_v35 = vmul.f32 %v831_v14, %v206_v11  ;;  %v240_v39 = vmul.f32 %v831_v14, %v207_v12  ;;  %v241_v40 = vmul.f32 %v831_v14, %v208_v13  ;;  %v224_v50 = vld [vmem:[%s808_s14 + $0xe8] sm:$0xff]  ;;  %v225_v51 = vld [vmem:[%s808_s14 + $0xf0] sm:$0xff]  ;;  %p570_p6 = por %p569_p1, %p568_p12 }
  0x49   : > { %264 = vst [vmem:[%s854_s13 + $0x20] sm:$0xff] %v232_v25  ;;  %265 = vst [vmem:[%s854_s13 + $0x28] sm:$0xff] %v233_v26  ;;  %v242_v41 = vmul.f32 %v831_v14, %v209_v15  ;;  %v243_v42 = vmul.f32 %v831_v14, %v210_v16  ;;  %v244_v46 = vmul.f32 %v831_v14, %v211_v17  ;;  %v226_v52 = vld [vmem:[%s808_s14 + $0xf8] sm:$0xff] }
  0x4a   : > { %266 = vst [vmem:[%s854_s13 + $0x30] sm:$0xff] %v234_v27  ;;  %267 = vst [vmem:[%s854_s13 + $0x38] sm:$0xff] %v235_v28  ;;  %v245_v47 = vmul.f32 %v831_v14, %v212_v22  ;;  %v246_v48 = vmul.f32 %v831_v14, %v213_v23  ;;  %v247_v49 = vmul.f32 %v831_v14, %v214_v24  ;;  %p571_p10 = pnand %p570_p6, %p564_p9 }
  0x4b   : > { %268 = vst [vmem:[%s854_s13 + $0x40] sm:$0xff] %v236_v32  ;;  %269 = vst [vmem:[%s854_s13 + $0x48] sm:$0xff] %v237_v33  ;;  %v248_v53 = vmul.f32 %v831_v14, %v215_v29  ;;  %v249_v54 = vmul.f32 %v831_v14, %v216_v30  ;;  %v250_v55 = vmul.f32 %v831_v14, %v217_v31 }
  0x4c   : > { %270 = vst [vmem:[%s854_s13 + $0x50] sm:$0xff] %v238_v34  ;;  %271 = vst [vmem:[%s854_s13 + $0x58] sm:$0xff] %v239_v35  ;;  %v251_v56 = vmul.f32 %v831_v14, %v218_v36  ;;  %v252_v57 = vmul.f32 %v831_v14, %v219_v37  ;;  %v253_v58 = vmul.f32 %v831_v14, %v220_v38 }
  0x4d   : > { %272 = vst [vmem:[%s854_s13 + $0x60] sm:$0xff] %v240_v39  ;;  %273 = vst [vmem:[%s854_s13 + $0x68] sm:$0xff] %v241_v40  ;;  %v254_v59 = vmul.f32 %v831_v14, %v221_v43  ;;  %v255_v60 = vmul.f32 %v831_v14, %v222_v44  ;;  %v256_v61 = vmul.f32 %v831_v14, %v223_v45 }
  0x4e   : > { %274 = vst [vmem:[%s854_s13 + $0x70] sm:$0xff] %v242_v41  ;;  %275 = vst [vmem:[%s854_s13 + $0x78] sm:$0xff] %v243_v42  ;;  %v257_v62 = vmul.f32 %v831_v14, %v224_v50  ;;  %v258_v63 = vmul.f32 %v831_v14, %v225_v51  ;;  %v259_v0 = vmul.f32 %v831_v14, %v226_v52 }
  0x4f   : > { %276 = vst [vmem:[%s854_s13 + $0x80] sm:$0xff] %v244_v46  ;;  %277 = vst [vmem:[%s854_s13 + $0x88] sm:$0xff] %v245_v47 }
  0x50   : > { %278 = vst [vmem:[%s854_s13 + $0x90] sm:$0xff] %v246_v48  ;;  %279 = vst [vmem:[%s854_s13 + $0x98] sm:$0xff] %v247_v49 }
  0x51   : > { %280 = vst [vmem:[%s854_s13 + $0xa0] sm:$0xff] %v248_v53  ;;  %281 = vst [vmem:[%s854_s13 + $0xa8] sm:$0xff] %v249_v54 }
  0x52   : > { %282 = vst [vmem:[%s854_s13 + $0xb0] sm:$0xff] %v250_v55  ;;  %283 = vst [vmem:[%s854_s13 + $0xb8] sm:$0xff] %v251_v56 }
  0x53   : > { %284 = vst [vmem:[%s854_s13 + $0xc0] sm:$0xff] %v252_v57  ;;  %285 = vst [vmem:[%s854_s13 + $0xc8] sm:$0xff] %v253_v58 }
  0x54   : > { %286 = vst [vmem:[%s854_s13 + $0xd0] sm:$0xff] %v254_v59  ;;  %287 = vst [vmem:[%s854_s13 + $0xd8] sm:$0xff] %v255_v60 }
  0x55   : > { %288 = vst [vmem:[%s854_s13 + $0xe0] sm:$0xff] %v256_v61  ;;  %289 = vst [vmem:[%s854_s13 + $0xe8] sm:$0xff] %v257_v62 }
  0x56   : > { %290 = vst [vmem:[%s854_s13 + $0xf0] sm:$0xff] %v258_v63  ;;  %291 = vst [vmem:[%s854_s13 + $0xf8] sm:$0xff] %v259_v0 }
  0x57   : > { %574 = shalt.err (!%p571_p10)
}
  0x58   : > { %s575_s6 = scalar_lea.hbm %s920_s17, 4096  ;;  %s579_s23 = scalar_lea.hbm %s983_s2, 16384 }
  0x59   : > { %p576_p11 = scmp.ne.s32.totalorder %s920_s17, %s575_s6  ;;  %p580_p2 = scmp.lt.s32.totalorder %s920_s17, %s983_s2 }
  0x5a   : > { %p581_p4 = scmp.lt.s32.totalorder %s579_s23, %s575_s6 }
  0x5b   : > { %p577_p13 = pnand %p576_p11, %p743_p8 }
  0x5c   : > { %p582_p5 = por %p581_p4, %p580_p2 }
  0x5d   : > { %p578_p0 = pneg %p577_p13 }
  0x5f   : > { %p583_p3 = pnand %p582_p5, %p578_p0 }
  0x61   : > { %586 = shalt.err (!%p583_p3)
}
  0x62   : > { %s668_s14 = smov 128   ;;  %s669_s19 = smov 8  }
  0x63   : > { %435 = dma.vmem_to_hbm [thread:$0]  (%p743_p8), %s907_s24, 4096, %s920_s17, %s293_s18, %s668_s14, %s668_s14, %s669_s19  }
  0x64 PF: > { %s1004_s20 = sld [smem:[#allocation13_spill]] }
  0x65   : > { %s1005_s21 = sld [smem:[#allocation11_spill]] }
  0x66   : > { %s1006_s12 = sld [smem:[#allocation14_spill]] }
  0x6a   : > { %p452_p7 = scmp.ge.s32.totalorder %s1004_s20, 2 }
  0x6b   : > { %s323_s13 = sand.u32 1, %s1005_s21  }
  0x6c   : > { %p1007_p9 = scmp.ne.s32.totalorder %s1006_s12, 0  ;;  %s324_s25 = scalar_lea.sflag [#allocation4], %s323_s13 }
  0x6e   : > { %p446_p12 = pnand %p452_p7, %p1007_p9 }
  0x70   : > { %p447_p1 = pneg %p446_p12 }
  0x72   : > { %628 = dma.done.wait (%p447_p1), %s324_s25, 4096  }
  0x73   : > { %630 = vsyncadd (%p447_p1), %s324_s25, 4294963200  ;;  %s19_s16 = sadd.s32 1, %s1004_s20   ;;  %s1008_s22 = smov %s789_s9 }
  0x74   : > { %p16_p6 = scmp.ge.s32.totalorder %s19_s16, 6   ;;  %s1009_s12 = sld [smem:[#allocation12_spill]] }
  0x75   : > { %s1010_s14 = sld [smem:[#allocation15_spill]]  ;;  %s1011_s9 = smov %s637_s10 }
  0x76   : > { %s1012_s10 = smov %s641_s11  ;;  %s1013_s11 = smov %s1008_s22 }
  0x77   : > { %s1014_s13 = smov %s657_s15  ;;  %s1015_s15 = smov %s1021_s27 }
  0x78   :  { %18 = sbr.rel (!%p16_p6) target bundleno = 10 (0xa), region = 78 }
  0x7d   :  { %329 = vsyncpa [#allocation3], 1 }
  0x7e   :  { %331 = vsyncpa [#allocation3 + $0x1], 1 }
  0x7f   :  { %332 = vsyncpa [#allocation4], 1 }
  0x80   :  { %334 = vsyncpa [#allocation4 + $0x1], 1 }
  0x81   :  { %335 = vsyncpa [#allocation5], 1 }
  0x82   :  { %337 = vsyncpa [#allocation5 + $0x1], 1 }

</bundles_post_ra>
